<compile_context>
chip_gen: v7x
topology: tpu7x:2x2x1
jax: 0.10.0
libtpu: 0.0.40
codegen_flags: <defaults>
</compile_context>

<pallas_src>
import math

import jax
import jax.numpy as jnp
from jax import lax
from jax.experimental import pallas as pl
from jax.experimental.pallas import tpu as pltpu

HIDDEN = 16   # hidden_size
INPUT = 1     # input_size
OUTPUT = 1    # output_size
SEQ = 8       # sequence length (must be even: unrolled steps alternate layouts)
BATCH = 1     # hidden_prev is fixed at (1, 1, hidden) in the reference script

# Row offsets inside the packed "rows" operand. Each single-row item gets its own
# 8-sublane tile so every static slice starts on a (8,128) tile boundary.
_WHH_OFF = 0                      # (H, H)  W_hh
_WHHT_OFF = HIDDEN                # (H, H)  W_hh.T
_WIH_ROW_OFF = 2 * HIDDEN         # (1, H)  W_ih[:, 0]
_B_ROW_OFF = 2 * HIDDEN + 8       # (1, H)  b_ih + b_hh
_WLIN_ROW_OFF = 2 * HIDDEN + 16   # (1, H)  W_lin[0, :]
_ROWS_TOTAL = 2 * HIDDEN + 24     # 56 (multiple of 8)


def rnn_kernel(sc_ref,     # SMEM (SEQ+1,)   : x[0..SEQ-1], b_lin at [SEQ]
               h0_ref,     # VMEM (H, 1)     : initial hidden state as a column
               rows_ref,   # VMEM (56, H)    : packed row-layout weights
               cols_ref,   # VMEM (H, 8)     : packed column-layout weights
               out_ref,    # VMEM (1, SEQ)
               hn_ref):    # VMEM (H, 1)
    # Hoist every weight load out of the (unrolled) time loop.
    whh = rows_ref[_WHH_OFF:_WHH_OFF + HIDDEN, :]              # (H, H)
    whh_t = rows_ref[_WHHT_OFF:_WHHT_OFF + HIDDEN, :]          # (H, H)
    wih_row = rows_ref[_WIH_ROW_OFF:_WIH_ROW_OFF + 1, :]       # (1, H)
    b_row = rows_ref[_B_ROW_OFF:_B_ROW_OFF + 1, :]             # (1, H)
    wlin_row = rows_ref[_WLIN_ROW_OFF:_WLIN_ROW_OFF + 1, :]    # (1, H)
    wih_col = cols_ref[:, 0:1]                                 # (H, 1)
    b_col = cols_ref[:, 1:2]                                   # (H, 1)
    wlin_col = cols_ref[:, 2:3]                                # (H, 1)

    blin = sc_ref[SEQ]                                         # scalar (SMEM)
    lane = lax.broadcasted_iota(jnp.int32, (1, SEQ), 1)
    out_acc = jnp.full((1, SEQ), blin, dtype=jnp.float32)

    h_col = h0_ref[...]                                        # (H, 1)
    h_row = None
    for t in range(SEQ):            # fully unrolled; carry stays in vregs
        x_t = sc_ref[t]             # scalar read from SMEM
        if t % 2 == 0:
            # column -> row step: pre[k] = b[k] + x*wih[k] + sum_j h[j]*Whh[k,j]
            pre = (b_row + x_t * wih_row
                   + jnp.sum(h_col * whh_t, axis=0, keepdims=True))   # (1, H)
            h_row = jnp.tanh(pre)
            y_t = jnp.sum(h_row * wlin_row, axis=1, keepdims=True)    # (1, 1)
        else:
            # row -> column step (same math in the transposed layout; no
            # lane<->sublane shuffle of the hidden state is ever needed)
            pre = (b_col + x_t * wih_col
                   + jnp.sum(h_row * whh, axis=1, keepdims=True))     # (H, 1)
            h_col = jnp.tanh(pre)
            y_t = jnp.sum(h_col * wlin_col, axis=0, keepdims=True)    # (1, 1)
        # Place y_t at lane t of the output row (pure VPU; off the serial chain).
        out_acc = out_acc + jnp.where(lane == t, 1.0, 0.0) * y_t

    out_ref[...] = out_acc          # single lane-dense (1, SEQ) store
    hn_ref[...] = h_col             # SEQ is even -> final state is a column


def pack_params(params):
    """One-time packing (outside the kernel call path): bias sum, transpose and
    all tiny operands folded into two VMEM arrays + the linear bias scalar."""
    w_ih, w_hh, b_ih, b_hh, w_lin, b_lin = params
    wih = w_ih[:, 0].astype(jnp.float32)       # (H,)
    b = (b_ih + b_hh).astype(jnp.float32)      # (H,)
    wlin = w_lin[0, :].astype(jnp.float32)     # (H,)

    rows = jnp.zeros((_ROWS_TOTAL, HIDDEN), jnp.float32)
    rows = rows.at[_WHH_OFF:_WHH_OFF + HIDDEN, :].set(w_hh.astype(jnp.float32))
    rows = rows.at[_WHHT_OFF:_WHHT_OFF + HIDDEN, :].set(w_hh.T.astype(jnp.float32))
    rows = rows.at[_WIH_ROW_OFF, :].set(wih)
    rows = rows.at[_B_ROW_OFF, :].set(b)
    rows = rows.at[_WLIN_ROW_OFF, :].set(wlin)

    cols = jnp.zeros((HIDDEN, 8), jnp.float32)
    cols = cols.at[:, 0].set(wih)
    cols = cols.at[:, 1].set(b)
    cols = cols.at[:, 2].set(wlin)

    blin = b_lin.reshape(OUTPUT).astype(jnp.float32)
    return rows, cols, blin


def net_forward(x, hidden_prev, packed):
    """x: (BATCH, SEQ, INPUT) f32; hidden_prev: (1, BATCH, HIDDEN) f32."""
    rows, cols, blin = packed
    # x scalars + linear bias share one 1-D SMEM array (no 2-D SMEM padding).
    scalars = jnp.concatenate([x.reshape(SEQ).astype(jnp.float32),
                               blin.reshape(1)])
    h0_col = hidden_prev.reshape(HIDDEN, 1).astype(jnp.float32)

    smem = pl.BlockSpec(memory_space=pltpu.MemorySpace.SMEM)
    vmem = pl.BlockSpec(memory_space=pltpu.MemorySpace.VMEM)

    out, hn = pl.pallas_call(
        rnn_kernel,
        out_shape=(jax.ShapeDtypeStruct((1, SEQ), jnp.float32),
                   jax.ShapeDtypeStruct((HIDDEN, 1), jnp.float32)),
        in_specs=[smem, vmem, vmem, vmem],
        out_specs=(vmem, vmem),
    )(scalars, h0_col, rows, cols)

    return out, hn.reshape(1, BATCH, HIDDEN)


def ref_forward(x, hidden_prev, params):
    """Pure-JAX reference matching nn.RNN(tanh) + Linear + the view/stack glue."""
    w_ih, w_hh, b_ih, b_hh, w_lin, b_lin = params
    h = hidden_prev[0]                                     # (BATCH, HIDDEN)
    outs = []
    for t in range(SEQ):
        xt = x[:, t, :]                                    # (BATCH, INPUT)
        h = jnp.tanh(xt @ w_ih.T + b_ih + h @ w_hh.T + b_hh)
        outs.append(h)
    out = jnp.stack(outs, axis=1).reshape(-1, HIDDEN)      # (BATCH*SEQ, HIDDEN)
    y = out @ w_lin.T + b_lin                              # (BATCH*SEQ, 1)
    y = y.reshape(-1)[None, :]                             # stack(dim=1) -> (1, B*S)
    return y, h[None]


def make_params(key):
    k1, k2, k3, k4, k5, k6 = jax.random.split(key, 6)
    # nn.RNN params re-initialized with init.normal(mean=0, std=0.001)
    w_ih = 0.001 * jax.random.normal(k1, (HIDDEN, INPUT), jnp.float32)
    w_hh = 0.001 * jax.random.normal(k2, (HIDDEN, HIDDEN), jnp.float32)
    b_ih = 0.001 * jax.random.normal(k3, (HIDDEN,), jnp.float32)
    b_hh = 0.001 * jax.random.normal(k4, (HIDDEN,), jnp.float32)
    # nn.Linear default init: U(-1/sqrt(fan_in), 1/sqrt(fan_in))
    bound = 1.0 / math.sqrt(HIDDEN)
    w_lin = jax.random.uniform(k5, (OUTPUT, HIDDEN), jnp.float32, -bound, bound)
    b_lin = jax.random.uniform(k6, (OUTPUT,), jnp.float32, -bound, bound)
    return w_ih, w_hh, b_ih, b_hh, w_lin, b_lin


if __name__ == "__main__":
    key = jax.random.PRNGKey(0)
    kp, kx = jax.random.split(key)
    params = make_params(kp)
    packed = pack_params(params)

    x = jax.random.normal(kx, (BATCH, SEQ, INPUT), jnp.float32)
    hidden_prev = jnp.zeros((1, BATCH, HIDDEN), jnp.float32)

    out, hn = net_forward(x, hidden_prev, packed)
    out = jax.block_until_ready(out)
    hn = jax.block_until_ready(hn)

    out_ref, hn_ref = ref_forward(x, hidden_prev, params)
    assert out.shape == (1, BATCH * SEQ)
    assert hn.shape == (1, BATCH, HIDDEN)
    assert jnp.allclose(out, out_ref, atol=1e-5, rtol=1e-5)
    assert jnp.allclose(hn.reshape(1, HIDDEN), hn_ref.reshape(1, HIDDEN),
                        atol=1e-5, rtol=1e-5)

    print("KERNEL_OK")
</pallas_src>

<mosaic_0001>
module attributes {stable_mosaic.version = 11 : i64} {
  func.func @rnn_kernel(%arg0: memref<9xf32, #tpu.memory_space<smem>>, %arg1: memref<16x1xf32, #tpu.memory_space<vmem>>, %arg2: memref<56x16xf32, #tpu.memory_space<vmem>>, %arg3: memref<16x8xf32, #tpu.memory_space<vmem>>, %arg4: memref<1x8xf32, #tpu.memory_space<vmem>>, %arg5: memref<16x1xf32, #tpu.memory_space<vmem>>) attributes {dimension_semantics = [], scalar_prefetch = 0 : i64, scratch_operands = 0 : i64, tpu.core_type = #tpu.core_type<tc>} {
    %c0 = arith.constant 0 : index
    %c0_0 = arith.constant 0 : index
    %0 = vector.load %arg2[%c0, %c0_0] : memref<56x16xf32, #tpu.memory_space<vmem>>, vector<16x16xf32>
    %c16 = arith.constant 16 : index
    %c0_1 = arith.constant 0 : index
    %1 = vector.load %arg2[%c16, %c0_1] : memref<56x16xf32, #tpu.memory_space<vmem>>, vector<16x16xf32>
    %c32 = arith.constant 32 : index
    %c0_2 = arith.constant 0 : index
    %2 = vector.load %arg2[%c32, %c0_2] : memref<56x16xf32, #tpu.memory_space<vmem>>, vector<1x16xf32>
    %c40 = arith.constant 40 : index
    %c0_3 = arith.constant 0 : index
    %3 = vector.load %arg2[%c40, %c0_3] : memref<56x16xf32, #tpu.memory_space<vmem>>, vector<1x16xf32>
    %c48 = arith.constant 48 : index
    %c0_4 = arith.constant 0 : index
    %4 = vector.load %arg2[%c48, %c0_4] : memref<56x16xf32, #tpu.memory_space<vmem>>, vector<1x16xf32>
    %c0_5 = arith.constant 0 : index
    %c0_6 = arith.constant 0 : index
    %5 = vector.load %arg3[%c0_5, %c0_6] : memref<16x8xf32, #tpu.memory_space<vmem>>, vector<16x1xf32>
    %c0_7 = arith.constant 0 : index
    %c1 = arith.constant 1 : index
    %6 = vector.load %arg3[%c0_7, %c1] : memref<16x8xf32, #tpu.memory_space<vmem>>, vector<16x1xf32>
    %c0_8 = arith.constant 0 : index
    %c2 = arith.constant 2 : index
    %7 = vector.load %arg3[%c0_8, %c2] : memref<16x8xf32, #tpu.memory_space<vmem>>, vector<16x1xf32>
    %c8 = arith.constant 8 : index
    %8 = memref.load %arg0[%c8] : memref<9xf32, #tpu.memory_space<smem>>
    %9 = tpu.iota {dimensions = array<i32: 1>} : vector<1x8xi32>
    %10 = vector.broadcast %8 : f32 to vector<1x8xf32>
    %c0_9 = arith.constant 0 : index
    %c0_10 = arith.constant 0 : index
    %11 = vector.load %arg1[%c0_9, %c0_10] : memref<16x1xf32, #tpu.memory_space<vmem>>, vector<16x1xf32>
    %c0_11 = arith.constant 0 : index
    %12 = memref.load %arg0[%c0_11] : memref<9xf32, #tpu.memory_space<smem>>
    %13 = vector.broadcast %12 : f32 to vector<1x16xf32>
    %14 = arith.mulf %13, %2 : vector<1x16xf32>
    %15 = arith.addf %3, %14 : vector<1x16xf32>
    %16 = vector.broadcast %11 : vector<16x1xf32> to vector<16x16xf32>
    %17 = arith.mulf %16, %1 : vector<16x16xf32>
    %cst = arith.constant dense<0.000000e+00> : vector<16xf32>
    %18 = vector.multi_reduction <add>, %17, %cst [0] : vector<16x16xf32> to vector<16xf32>
    %19 = vector.shape_cast %18 : vector<16xf32> to vector<1x16xf32>
    %20 = arith.addf %15, %19 : vector<1x16xf32>
    %21 = math.tanh %20 : vector<1x16xf32>
    %22 = arith.mulf %21, %4 : vector<1x16xf32>
    %cst_12 = arith.constant dense<0.000000e+00> : vector<1xf32>
    %23 = vector.multi_reduction <add>, %22, %cst_12 [1] : vector<1x16xf32> to vector<1xf32>
    %24 = vector.shape_cast %23 : vector<1xf32> to vector<1x1xf32>
    %c0_i32 = arith.constant 0 : i32
    %25 = vector.broadcast %c0_i32 : i32 to vector<1x8xi32>
    %26 = arith.cmpi eq, %9, %25 : vector<1x8xi32>
    %cst_13 = arith.constant 1.000000e+00 : f32
    %cst_14 = arith.constant 0.000000e+00 : f32
    %27 = vector.broadcast %cst_13 : f32 to vector<1x8xf32>
    %28 = vector.broadcast %cst_14 : f32 to vector<1x8xf32>
    %29 = arith.select %26, %27, %28 : vector<1x8xi1>, vector<1x8xf32>
    %30 = vector.broadcast %24 : vector<1x1xf32> to vector<1x8xf32>
    %31 = arith.mulf %29, %30 : vector<1x8xf32>
    %32 = arith.addf %10, %31 : vector<1x8xf32>
    %c1_15 = arith.constant 1 : index
    %33 = memref.load %arg0[%c1_15] : memref<9xf32, #tpu.memory_space<smem>>
    %34 = vector.broadcast %33 : f32 to vector<16x1xf32>
    %35 = arith.mulf %34, %5 : vector<16x1xf32>
    %36 = arith.addf %6, %35 : vector<16x1xf32>
    %37 = vector.broadcast %21 : vector<1x16xf32> to vector<16x16xf32>
    %38 = arith.mulf %37, %0 : vector<16x16xf32>
    %cst_16 = arith.constant dense<0.000000e+00> : vector<16xf32>
    %39 = vector.multi_reduction <add>, %38, %cst_16 [1] : vector<16x16xf32> to vector<16xf32>
    %40 = vector.shape_cast %39 : vector<16xf32> to vector<16x1xf32>
    %41 = arith.addf %36, %40 : vector<16x1xf32>
    %42 = math.tanh %41 : vector<16x1xf32>
    %43 = arith.mulf %42, %7 : vector<16x1xf32>
    %cst_17 = arith.constant dense<0.000000e+00> : vector<1xf32>
    %44 = vector.multi_reduction <add>, %43, %cst_17 [0] : vector<16x1xf32> to vector<1xf32>
    %45 = vector.shape_cast %44 : vector<1xf32> to vector<1x1xf32>
    %c1_i32 = arith.constant 1 : i32
    %46 = vector.broadcast %c1_i32 : i32 to vector<1x8xi32>
    %47 = arith.cmpi eq, %9, %46 : vector<1x8xi32>
    %cst_18 = arith.constant 1.000000e+00 : f32
    %cst_19 = arith.constant 0.000000e+00 : f32
    %48 = vector.broadcast %cst_18 : f32 to vector<1x8xf32>
    %49 = vector.broadcast %cst_19 : f32 to vector<1x8xf32>
    %50 = arith.select %47, %48, %49 : vector<1x8xi1>, vector<1x8xf32>
    %51 = vector.broadcast %45 : vector<1x1xf32> to vector<1x8xf32>
    %52 = arith.mulf %50, %51 : vector<1x8xf32>
    %53 = arith.addf %32, %52 : vector<1x8xf32>
    %c2_20 = arith.constant 2 : index
    %54 = memref.load %arg0[%c2_20] : memref<9xf32, #tpu.memory_space<smem>>
    %55 = vector.broadcast %54 : f32 to vector<1x16xf32>
    %56 = arith.mulf %55, %2 : vector<1x16xf32>
    %57 = arith.addf %3, %56 : vector<1x16xf32>
    %58 = vector.broadcast %42 : vector<16x1xf32> to vector<16x16xf32>
    %59 = arith.mulf %58, %1 : vector<16x16xf32>
    %cst_21 = arith.constant dense<0.000000e+00> : vector<16xf32>
    %60 = vector.multi_reduction <add>, %59, %cst_21 [0] : vector<16x16xf32> to vector<16xf32>
    %61 = vector.shape_cast %60 : vector<16xf32> to vector<1x16xf32>
    %62 = arith.addf %57, %61 : vector<1x16xf32>
    %63 = math.tanh %62 : vector<1x16xf32>
    %64 = arith.mulf %63, %4 : vector<1x16xf32>
    %cst_22 = arith.constant dense<0.000000e+00> : vector<1xf32>
    %65 = vector.multi_reduction <add>, %64, %cst_22 [1] : vector<1x16xf32> to vector<1xf32>
    %66 = vector.shape_cast %65 : vector<1xf32> to vector<1x1xf32>
    %c2_i32 = arith.constant 2 : i32
    %67 = vector.broadcast %c2_i32 : i32 to vector<1x8xi32>
    %68 = arith.cmpi eq, %9, %67 : vector<1x8xi32>
    %cst_23 = arith.constant 1.000000e+00 : f32
    %cst_24 = arith.constant 0.000000e+00 : f32
    %69 = vector.broadcast %cst_23 : f32 to vector<1x8xf32>
    %70 = vector.broadcast %cst_24 : f32 to vector<1x8xf32>
    %71 = arith.select %68, %69, %70 : vector<1x8xi1>, vector<1x8xf32>
    %72 = vector.broadcast %66 : vector<1x1xf32> to vector<1x8xf32>
    %73 = arith.mulf %71, %72 : vector<1x8xf32>
    %74 = arith.addf %53, %73 : vector<1x8xf32>
    %c3 = arith.constant 3 : index
    %75 = memref.load %arg0[%c3] : memref<9xf32, #tpu.memory_space<smem>>
    %76 = vector.broadcast %75 : f32 to vector<16x1xf32>
    %77 = arith.mulf %76, %5 : vector<16x1xf32>
    %78 = arith.addf %6, %77 : vector<16x1xf32>
    %79 = vector.broadcast %63 : vector<1x16xf32> to vector<16x16xf32>
    %80 = arith.mulf %79, %0 : vector<16x16xf32>
    %cst_25 = arith.constant dense<0.000000e+00> : vector<16xf32>
    %81 = vector.multi_reduction <add>, %80, %cst_25 [1] : vector<16x16xf32> to vector<16xf32>
    %82 = vector.shape_cast %81 : vector<16xf32> to vector<16x1xf32>
    %83 = arith.addf %78, %82 : vector<16x1xf32>
    %84 = math.tanh %83 : vector<16x1xf32>
    %85 = arith.mulf %84, %7 : vector<16x1xf32>
    %cst_26 = arith.constant dense<0.000000e+00> : vector<1xf32>
    %86 = vector.multi_reduction <add>, %85, %cst_26 [0] : vector<16x1xf32> to vector<1xf32>
    %87 = vector.shape_cast %86 : vector<1xf32> to vector<1x1xf32>
    %c3_i32 = arith.constant 3 : i32
    %88 = vector.broadcast %c3_i32 : i32 to vector<1x8xi32>
    %89 = arith.cmpi eq, %9, %88 : vector<1x8xi32>
    %cst_27 = arith.constant 1.000000e+00 : f32
    %cst_28 = arith.constant 0.000000e+00 : f32
    %90 = vector.broadcast %cst_27 : f32 to vector<1x8xf32>
    %91 = vector.broadcast %cst_28 : f32 to vector<1x8xf32>
    %92 = arith.select %89, %90, %91 : vector<1x8xi1>, vector<1x8xf32>
    %93 = vector.broadcast %87 : vector<1x1xf32> to vector<1x8xf32>
    %94 = arith.mulf %92, %93 : vector<1x8xf32>
    %95 = arith.addf %74, %94 : vector<1x8xf32>
    %c4 = arith.constant 4 : index
    %96 = memref.load %arg0[%c4] : memref<9xf32, #tpu.memory_space<smem>>
    %97 = vector.broadcast %96 : f32 to vector<1x16xf32>
    %98 = arith.mulf %97, %2 : vector<1x16xf32>
    %99 = arith.addf %3, %98 : vector<1x16xf32>
    %100 = vector.broadcast %84 : vector<16x1xf32> to vector<16x16xf32>
    %101 = arith.mulf %100, %1 : vector<16x16xf32>
    %cst_29 = arith.constant dense<0.000000e+00> : vector<16xf32>
    %102 = vector.multi_reduction <add>, %101, %cst_29 [0] : vector<16x16xf32> to vector<16xf32>
    %103 = vector.shape_cast %102 : vector<16xf32> to vector<1x16xf32>
    %104 = arith.addf %99, %103 : vector<1x16xf32>
    %105 = math.tanh %104 : vector<1x16xf32>
    %106 = arith.mulf %105, %4 : vector<1x16xf32>
    %cst_30 = arith.constant dense<0.000000e+00> : vector<1xf32>
    %107 = vector.multi_reduction <add>, %106, %cst_30 [1] : vector<1x16xf32> to vector<1xf32>
    %108 = vector.shape_cast %107 : vector<1xf32> to vector<1x1xf32>
    %c4_i32 = arith.constant 4 : i32
    %109 = vector.broadcast %c4_i32 : i32 to vector<1x8xi32>
    %110 = arith.cmpi eq, %9, %109 : vector<1x8xi32>
    %cst_31 = arith.constant 1.000000e+00 : f32
    %cst_32 = arith.constant 0.000000e+00 : f32
    %111 = vector.broadcast %cst_31 : f32 to vector<1x8xf32>
    %112 = vector.broadcast %cst_32 : f32 to vector<1x8xf32>
    %113 = arith.select %110, %111, %112 : vector<1x8xi1>, vector<1x8xf32>
    %114 = vector.broadcast %108 : vector<1x1xf32> to vector<1x8xf32>
    %115 = arith.mulf %113, %114 : vector<1x8xf32>
    %116 = arith.addf %95, %115 : vector<1x8xf32>
    %c5 = arith.constant 5 : index
    %117 = memref.load %arg0[%c5] : memref<9xf32, #tpu.memory_space<smem>>
    %118 = vector.broadcast %117 : f32 to vector<16x1xf32>
    %119 = arith.mulf %118, %5 : vector<16x1xf32>
    %120 = arith.addf %6, %119 : vector<16x1xf32>
    %121 = vector.broadcast %105 : vector<1x16xf32> to vector<16x16xf32>
    %122 = arith.mulf %121, %0 : vector<16x16xf32>
    %cst_33 = arith.constant dense<0.000000e+00> : vector<16xf32>
    %123 = vector.multi_reduction <add>, %122, %cst_33 [1] : vector<16x16xf32> to vector<16xf32>
    %124 = vector.shape_cast %123 : vector<16xf32> to vector<16x1xf32>
    %125 = arith.addf %120, %124 : vector<16x1xf32>
    %126 = math.tanh %125 : vector<16x1xf32>
    %127 = arith.mulf %126, %7 : vector<16x1xf32>
    %cst_34 = arith.constant dense<0.000000e+00> : vector<1xf32>
    %128 = vector.multi_reduction <add>, %127, %cst_34 [0] : vector<16x1xf32> to vector<1xf32>
    %129 = vector.shape_cast %128 : vector<1xf32> to vector<1x1xf32>
    %c5_i32 = arith.constant 5 : i32
    %130 = vector.broadcast %c5_i32 : i32 to vector<1x8xi32>
    %131 = arith.cmpi eq, %9, %130 : vector<1x8xi32>
    %cst_35 = arith.constant 1.000000e+00 : f32
    %cst_36 = arith.constant 0.000000e+00 : f32
    %132 = vector.broadcast %cst_35 : f32 to vector<1x8xf32>
    %133 = vector.broadcast %cst_36 : f32 to vector<1x8xf32>
    %134 = arith.select %131, %132, %133 : vector<1x8xi1>, vector<1x8xf32>
    %135 = vector.broadcast %129 : vector<1x1xf32> to vector<1x8xf32>
    %136 = arith.mulf %134, %135 : vector<1x8xf32>
    %137 = arith.addf %116, %136 : vector<1x8xf32>
    %c6 = arith.constant 6 : index
    %138 = memref.load %arg0[%c6] : memref<9xf32, #tpu.memory_space<smem>>
    %139 = vector.broadcast %138 : f32 to vector<1x16xf32>
    %140 = arith.mulf %139, %2 : vector<1x16xf32>
    %141 = arith.addf %3, %140 : vector<1x16xf32>
    %142 = vector.broadcast %126 : vector<16x1xf32> to vector<16x16xf32>
    %143 = arith.mulf %142, %1 : vector<16x16xf32>
    %cst_37 = arith.constant dense<0.000000e+00> : vector<16xf32>
    %144 = vector.multi_reduction <add>, %143, %cst_37 [0] : vector<16x16xf32> to vector<16xf32>
    %145 = vector.shape_cast %144 : vector<16xf32> to vector<1x16xf32>
    %146 = arith.addf %141, %145 : vector<1x16xf32>
    %147 = math.tanh %146 : vector<1x16xf32>
    %148 = arith.mulf %147, %4 : vector<1x16xf32>
    %cst_38 = arith.constant dense<0.000000e+00> : vector<1xf32>
    %149 = vector.multi_reduction <add>, %148, %cst_38 [1] : vector<1x16xf32> to vector<1xf32>
    %150 = vector.shape_cast %149 : vector<1xf32> to vector<1x1xf32>
    %c6_i32 = arith.constant 6 : i32
    %151 = vector.broadcast %c6_i32 : i32 to vector<1x8xi32>
    %152 = arith.cmpi eq, %9, %151 : vector<1x8xi32>
    %cst_39 = arith.constant 1.000000e+00 : f32
    %cst_40 = arith.constant 0.000000e+00 : f32
    %153 = vector.broadcast %cst_39 : f32 to vector<1x8xf32>
    %154 = vector.broadcast %cst_40 : f32 to vector<1x8xf32>
    %155 = arith.select %152, %153, %154 : vector<1x8xi1>, vector<1x8xf32>
    %156 = vector.broadcast %150 : vector<1x1xf32> to vector<1x8xf32>
    %157 = arith.mulf %155, %156 : vector<1x8xf32>
    %158 = arith.addf %137, %157 : vector<1x8xf32>
    %c7 = arith.constant 7 : index
    %159 = memref.load %arg0[%c7] : memref<9xf32, #tpu.memory_space<smem>>
    %160 = vector.broadcast %159 : f32 to vector<16x1xf32>
    %161 = arith.mulf %160, %5 : vector<16x1xf32>
    %162 = arith.addf %6, %161 : vector<16x1xf32>
    %163 = vector.broadcast %147 : vector<1x16xf32> to vector<16x16xf32>
    %164 = arith.mulf %163, %0 : vector<16x16xf32>
    %cst_41 = arith.constant dense<0.000000e+00> : vector<16xf32>
    %165 = vector.multi_reduction <add>, %164, %cst_41 [1] : vector<16x16xf32> to vector<16xf32>
    %166 = vector.shape_cast %165 : vector<16xf32> to vector<16x1xf32>
    %167 = arith.addf %162, %166 : vector<16x1xf32>
    %168 = math.tanh %167 : vector<16x1xf32>
    %169 = arith.mulf %168, %7 : vector<16x1xf32>
    %cst_42 = arith.constant dense<0.000000e+00> : vector<1xf32>
    %170 = vector.multi_reduction <add>, %169, %cst_42 [0] : vector<16x1xf32> to vector<1xf32>
    %171 = vector.shape_cast %170 : vector<1xf32> to vector<1x1xf32>
    %c7_i32 = arith.constant 7 : i32
    %172 = vector.broadcast %c7_i32 : i32 to vector<1x8xi32>
    %173 = arith.cmpi eq, %9, %172 : vector<1x8xi32>
    %cst_43 = arith.constant 1.000000e+00 : f32
    %cst_44 = arith.constant 0.000000e+00 : f32
    %174 = vector.broadcast %cst_43 : f32 to vector<1x8xf32>
    %175 = vector.broadcast %cst_44 : f32 to vector<1x8xf32>
    %176 = arith.select %173, %174, %175 : vector<1x8xi1>, vector<1x8xf32>
    %177 = vector.broadcast %171 : vector<1x1xf32> to vector<1x8xf32>
    %178 = arith.mulf %176, %177 : vector<1x8xf32>
    %179 = arith.addf %158, %178 : vector<1x8xf32>
    %c0_45 = arith.constant 0 : index
    %c0_46 = arith.constant 0 : index
    %180 = vector.load %arg4[%c0_45, %c0_46] : memref<1x8xf32, #tpu.memory_space<vmem>>, vector<1x8xf32>
    tpu.vector_store %arg4[%c0_45, %c0_46], %179 {strides = array<i32>} : memref<1x8xf32, #tpu.memory_space<vmem>>, vector<1x8xf32>,
    %c0_47 = arith.constant 0 : index
    %c0_48 = arith.constant 0 : index
    %181 = vector.load %arg5[%c0_47, %c0_48] : memref<16x1xf32, #tpu.memory_space<vmem>>, vector<16x1xf32>
    tpu.vector_store %arg5[%c0_47, %c0_48], %168 {strides = array<i32>} : memref<16x1xf32, #tpu.memory_space<vmem>>, vector<16x1xf32>,
    return
  }
}

</mosaic_0001>

<bundles_post_ra>
// kernel: tpu_custom_call.1
= control target key start
LH: loop header
LB: loop body
LE: loop exit
PB: predicated region body
PF: predicated region fallthrough
CT: control target
= control target key end

     0   :  { %11 = vsyncpa [#allocation4], 0  ;;  %s777_s0 = inlined_call_operand.vmem [shape: f32[9], index: 0, kind: input, shape index: {}]   ;;  %s778_s1 = inlined_call_operand.vmem [shape: f32[16,1], index: 1, kind: input, shape index: {}]   ;;  %s779_s2 = inlined_call_operand.vmem [shape: f32[56,16], index: 2, kind: input, shape index: {}]   ;;  %s780_s3 = inlined_call_operand.vmem [shape: f32[16,8], index: 3, kind: input, shape index: {}]   ;;  %s781_s4 = inlined_call_operand.hbm [shape: f32[1,8], index: 4, kind: output, shape index: {0}]   ;;  %s782_s5 = inlined_call_operand.vmem [shape: f32[16,1], index: 5, kind: output, shape index: {1}]  }
   0x1   :  { %12 = vsyncpa [#allocation3], 0  ;;  %s19_s20 = sshll.u32 %s777_s0, 4  ;;  %s20_s20 = int_to_ptr.vmem [resolvable:$true] %s19_s20 }
   0x2   :  { %s473_s21 = scalar_lea.vmem %s20_s20, 16  ;;  %p478_p1 = scmp.lt.s32.totalorder %s20_s20, %s20_s20 }
   0x3   :  { %p474_p0 = scmp.ne.s32.totalorder %s20_s20, %s473_s21  ;;  %p479_p2 = scmp.lt.s32.totalorder %s473_s21, %s473_s21 }
   0x5   :  { %p480_p3 = por %p479_p2, %p478_p1 }
   0x7   :  { %p481_p4 = pnand %p480_p3, %p474_p0 }
   0x9   :  { %484 = shalt.err (!%p481_p4)
}
   0xa   :  { %s511_s22 = smov [#allocation2]  }
   0xb   :  { %22 = dma.vmem_to_smem %s20_s20, 16, %s511_s22, [#allocation4]  }
   0xc   :  { %507 = dma.done.wait [#allocation4], 16  }
   0xd   :  { %508 = vsyncadd [#allocation4], 4294967280 }
   0xe   :  { %32 = sfence }
   0xf   :  { %v46_v0 = vld [vmem:[%s778_s1] sm:$0xff]  ;;  %v512_v1 = vmov 0   ;;  %v47_v2 = vld [vmem:[%s778_s1 + $0x8] sm:$0xff]  ;;  %s557_s26 = sld [smem:[#allocation2 + $0x1]]  ;;  %s513_s29 = smov 1   ;;  %v570_v7 = vld [vmem:[%s779_s2 + $0x10] sm:$0xff]  ;;  %v43_v27 = vlaneseq }
  0x10   :  { %446 = vset.pattern.permute.xlu0 %v512_v1  ;;  %v562_v3 = vld [vmem:[%s780_s3] sm:$0xff]  ;;  %v575_v8 = vld [vmem:[%s779_s2 + $0x18] sm:$0xff]  ;;  %s48_s8 = sld [smem:[#allocation2]]  ;;  %vm64_vm0 = vcmask 130048   ;;  %v590_v21 = vld [vmem:[%s779_s2 + $0x28] sm:$0x1] }
  0x11   :  { %54 = vperm.xlu0 %446, %v46_v0   ;;  %v584_v17 = vld [vmem:[%s779_s2 + $0x20] sm:$0x1]  ;;  %v100_v28 = vshrl.u32 %v43_v27, 7  ;;  %v608_v33 = vld [vmem:[%s779_s2 + $0x8] sm:$0xff]  ;;  %v514_v40 = vmov 1   ;;  %s434_s19 = sld [smem:[#allocation2 + $0x3]] }
  0x12   :  { %v601_v31 = vld [vmem:[%s779_s2] sm:$0xff]  ;;  %v617_v38 = vld [vmem:[%s780_s3 + $0x8] sm:$0xff]  ;;  %448 = vset.pattern.permute.xlu1 %v514_v40  ;;  %s433_s3 = sld [smem:[#allocation2 + $0x2]]  ;;  %s435_s20 = sld [smem:[#allocation2 + $0x4]]  ;;  %vm77_vm1 = vcmask 122880   ;;  %vm125_vm3 = vcmask 15368  }
  0x13   :  { %v594_v29 = vsub.s32 0, %v100_v28  ;;  %s436_s21 = sld [smem:[#allocation2 + $0x5]]  ;;  %s675_s22 = sld [smem:[#allocation2 + $0x7]]  ;;  %vm409_vm7 = vcmask 7168   ;;  %vm399_vm12 = vcmask 57344  }
  0x14   :  { %s515_s0 = smov 127   ;;  %s437_s25 = sld [smem:[#allocation2 + $0x6]] }
  0x15   :  { %59 = vperm.xlu0 %446, %v47_v2   ;;  %v86_v4 = vstv %s557_s26 }
  0x16   :  { %v87_v5 = vmul.f32 %v86_v4, %v562_v3  ;;  %v49_v16 = vstv %s48_s8  ;;  %v88_v39 = vmul.f32 %v86_v4, %v617_v38 }
  0x17   :  { %v50_v19 = vmul.f32 %v49_v16, %v584_v17 }
  0x18   :  { %v145_v59 = vstv %s433_s3 }
  0x19   :  { %91 = vrot.lane.b32.xlu0 %v87_v5, %s513_s29  ;;  %v51_v23 = vadd.f32 %v50_v19, %v590_v21  ;;  %v146_v61 = vmul.f32 %v145_v59, %v584_v17  ;;  %v265_v59 = vstv %s436_s21 }
  0x1a   :  { %447 = vset.pattern.permute.xlu0 %v514_v40 }
  0x1b   :  { %v147_v0 = vadd.f32 %v146_v61, %v590_v21  ;;  %v266_v61 = vmul.f32 %v265_v59, %v562_v3 }
  0x90   :  { %v55_v6 = vpop.permute.xlu0 %54 }
  0x91   :  { %v62_v9 = vmul.f32 %v55_v6, %v570_v7 }
  0x93   :  { %v65_v12 = vsel %vm64_vm0, %v62_v9, 0.0 }
  0x94   :  { %v60_v10 = vpop.permute.xlu0 %59 }
  0x95   :  { %v63_v11 = vmul.f32 %v60_v10, %v575_v8 }
  0x97   :  { %v66_v13 = vsel %vm64_vm0, %v63_v11, 0.0 }
  0x98   :  { %v67_v14 = vadd.f32 %v66_v13, %v65_v12  ;;  %v92_v41 = vpop.permute.xlu0 %91  ;;  %v180_v13 = vstv %s434_s19 }
  0x99   :  { %v97_v42 = vadd.f32 %v92_v41, %v562_v3 }
  0x9a   :  { %v68_v15 = vrot.slane %v67_v14, 4 }
  0x9c   :  { %v69_v18 = vadd.f32 %v68_v15, %v67_v14  ;;  %v182_v14 = vmul.f32 %v180_v13, %v617_v38  ;;  %v181_v15 = vmul.f32 %v180_v13, %v562_v3 }
  0x9e   :  { %v70_v20 = vrot.slane %v69_v18, 2 }
  0xa0   :  { %v71_v22 = vadd.f32 %v70_v20, %v69_v18 }
  0xa2   :  { %v72_v24 = vrot.slane %v71_v22, 1 }
  0xa4   :  { %v73_v25 = vadd.f32 %v72_v24, %v71_v22 }
  0xa6   :  { %v74_v26 = vadd.f32 %v73_v25, %v51_v23 }
  0xa8   :  { %449 = vtanh.f32 %v74_v26 }
  0xb2   :  { %v596_v30 = vpop.eup %449 }
  0xb3   :  { %v102_v32 = vrot.slane %v596_v30, %v594_v29 }
  0xb5   :  { %v103_v34 = vmul.f32 %v102_v32, %v601_v31  ;;  %v104_v36 = vmul.f32 %v102_v32, %v608_v33 }
  0xb7   :  { %v105_v35 = vsel %vm64_vm0, %v103_v34, 0.0  ;;  %v108_v37 = vsel %vm64_vm0, %v104_v36, 0.0 }
  0xb8   :  { %106 = vadd.xlane.f32.xlu1 %v105_v35 }
  0xbc   :  { %109 = vadd.xlane.f32.xlu1 %v108_v37 }
  0xcd   :  { %93 = vrot.lane.b32.xlu1 %v88_v39, %s513_s29 }
 0x145   :  { %v107_v43 = vpop.xlane.xlu1 %106 }
 0x146   :  { %v111_v44 = vadd.f32 %v107_v43, %v97_v42  ;;  %v230_v42 = vstv %s435_s20 }
 0x148   :  { %451 = vtanh.f32 %v111_v44  ;;  %v231_v44 = vmul.f32 %v230_v42, %v584_v17 }
 0x149   :  { %v110_v45 = vpop.xlane.xlu1 %109 }
 0x14d   :  { %v94_v46 = vpop.permute.xlu1 %93 }
 0x14e   :  { %v98_v47 = vadd.f32 %v94_v46, %v617_v38 }
 0x150   :  { %v112_v48 = vadd.f32 %v110_v45, %v98_v47  ;;  %v232_v47 = vadd.f32 %v231_v44, %v590_v21 }
 0x152   :  { %v623_v49 = vpop.eup %451  ;;  %453 = vtanh.f32 %v112_v48 }
 0x153   :  { %150 = vperm.xlu0 %447, %v623_v49  }
 0x15c   :  { %v626_v50 = vpop.eup %453 }
 0x15d   :  { %155 = vperm.xlu0 %447, %v626_v50  }
 0x1d2   :  { %v151_v51 = vpop.permute.xlu0 %150 }
 0x1d3   :  { %v158_v52 = vmul.f32 %v151_v51, %v570_v7 }
 0x1d5   :  { %v160_v55 = vsel %vm64_vm0, %v158_v52, 0.0 }
 0x1dc   :  { %v156_v53 = vpop.permute.xlu0 %155 }
 0x1dd   :  { %v159_v54 = vmul.f32 %v156_v53, %v575_v8 }
 0x1df   :  { %v161_v56 = vsel %vm64_vm0, %v159_v54, 0.0 }
 0x1e0   :  { %v162_v57 = vadd.f32 %v161_v56, %v160_v55 }
 0x1e2   :  { %v163_v58 = vrot.slane %v162_v57, 4 }
 0x1e4   :  { %v164_v60 = vadd.f32 %v163_v58, %v162_v57 }
 0x1e6   :  { %v165_v62 = vrot.slane %v164_v60, 2 }
 0x1e8   :  { %v166_v63 = vadd.f32 %v165_v62, %v164_v60  ;;  %v267_v60 = vmul.f32 %v265_v59, %v617_v38 }
 0x1ea   :  { %v167_v1 = vrot.slane %v166_v63, 1 }
 0x1ec   :  { %v168_v2 = vadd.f32 %v167_v1, %v166_v63 }
 0x1ee   :  { %v169_v4 = vadd.f32 %v168_v2, %v147_v0 }
 0x1f0   :  { %455 = vtanh.f32 %v169_v4 }
 0x1fa   :  { %v635_v5 = vpop.eup %455 }
 0x1fb   :  { %v196_v6 = vrot.slane %v635_v5, %v594_v29 }
 0x1fd   :  { %v198_v9 = vmul.f32 %v196_v6, %v608_v33  ;;  %v197_v10 = vmul.f32 %v196_v6, %v601_v31 }
 0x1ff   :  { %v202_v11 = vsel %vm64_vm0, %v198_v9, 0.0  ;;  %v199_v12 = vsel %vm64_vm0, %v197_v10, 0.0  ;;  %v350_v10 = vstv %s675_s22 }
 0x200   :  { %203 = vadd.xlane.f32.xlu1 %v202_v11  ;;  %200 = vadd.xlane.f32.xlu0 %v199_v12  ;;  %v351_v13 = vmul.f32 %v350_v10, %v562_v3 }
 0x211   :  { %187 = vrot.lane.b32.xlu1 %v182_v14, %s513_s29  ;;  %v686_v14 = vld [vmem:[%s779_s2 + $0x30] sm:$0x1]  ;;  %s431_s2 = sld [smem:[#allocation2 + $0x8]] }
 0x216   :  { %185 = vrot.lane.b32.xlu0 %v181_v15, %s513_s29  ;;  %v76_v15 = vmul.f32 %v596_v30, %v686_v14 }
 0x28d   :  { %v204_v16 = vpop.xlane.xlu1 %203  ;;  %v201_v18 = vpop.xlane.xlu0 %200 }
 0x291   :  { %v188_v19 = vpop.permute.xlu1 %187  ;;  %v186_v20 = vpop.permute.xlu0 %185 }
 0x292   :  { %v192_v22 = vadd.f32 %v188_v19, %v617_v38  ;;  %v191_v23 = vadd.f32 %v186_v20, %v562_v3 }
 0x294   :  { %v206_v24 = vadd.f32 %v204_v16, %v192_v22  ;;  %v205_v25 = vadd.f32 %v201_v18, %v191_v23  ;;  %v78_v16 = vsel %vm77_vm1, %v76_v15, 0.0 }
 0x296   :  { %457 = vtanh.f32 %v206_v24 }
 0x297   :  { %459 = vtanh.f32 %v205_v25 }
 0x2a0   :  { %v649_v26 = vpop.eup %457 }
 0x2a1   :  { %v651_v28 = vpop.eup %459  ;;  %240 = vperm.xlu1 %448, %v649_v26  }
 0x2a2   :  { %235 = vperm.xlu0 %447, %v651_v28  }
 0x320   :  { %v241_v32 = vpop.permute.xlu1 %240 }
 0x321   :  { %v244_v34 = vmul.f32 %v241_v32, %v575_v8  ;;  %v236_v35 = vpop.permute.xlu0 %235  ;;  %v315_v32 = vstv %s437_s25 }
 0x322   :  { %v243_v36 = vmul.f32 %v236_v35, %v570_v7  ;;  %v316_v35 = vmul.f32 %v315_v32, %v584_v17 }
 0x323   :  { %v246_v37 = vsel %vm64_vm0, %v244_v34, 0.0 }
 0x324   :  { %v245_v39 = vsel %vm64_vm0, %v243_v36, 0.0 }
 0x325   :  { %v247_v40 = vadd.f32 %v246_v37, %v245_v39  ;;  %v317_v39 = vadd.f32 %v316_v35, %v590_v21  ;;  %v516_v21 = vmov 0.0  }
 0x327   :  { %v248_v41 = vrot.slane %v247_v40, 4 }
 0x329   :  { %v249_v43 = vadd.f32 %v248_v41, %v247_v40 }
 0x32b   :  { %v250_v45 = vrot.slane %v249_v43, 2 }
 0x32d   :  { %v251_v46 = vadd.f32 %v250_v45, %v249_v43 }
 0x32f   :  { %v252_v48 = vrot.slane %v251_v46, 1 }
 0x331   :  { %v253_v51 = vadd.f32 %v252_v48, %v251_v46  ;;  %v708_v46 = vand.u32 127, %v43_v27  ;;  %v171_v27 = vmul.f32 %v635_v5, %v686_v14 }
 0x333   :  { %v254_v52 = vadd.f32 %v253_v51, %v232_v47  ;;  %vm81_vm2 = vcmp.eq.s32.totalorder %v708_v46, 0  ;;  %vm135_vm4 = vcmp.eq.s32.totalorder %v708_v46, 1  ;;  %vm175_vm5 = vcmp.eq.s32.totalorder %v708_v46, 2 }
 0x334   :  { %v82_v47 = vsel %vm81_vm2, 1.0, %v516_v21  ;;  %vm220_vm6 = vcmp.eq.s32.totalorder %v708_v46, 3  ;;  %vm260_vm8 = vcmp.eq.s32.totalorder %v708_v46, 4  ;;  %vm305_vm9 = vcmp.eq.s32.totalorder %v708_v46, 5 }
 0x335   :  { %461 = vtanh.f32 %v254_v52  ;;  %vm345_vm10 = vcmp.eq.s32.totalorder %v708_v46, 6  ;;  %vm390_vm11 = vcmp.eq.s32.totalorder %v708_v46, 7 }
 0x33f   :  { %v661_v53 = vpop.eup %461 }
 0x340   :  { %v281_v54 = vrot.slane %v661_v53, %v594_v29 }
 0x342   :  { %v283_v55 = vmul.f32 %v281_v54, %v608_v33  ;;  %v282_v56 = vmul.f32 %v281_v54, %v601_v31 }
 0x344   :  { %v287_v57 = vsel %vm64_vm0, %v283_v55, 0.0  ;;  %v284_v58 = vsel %vm64_vm0, %v282_v56, 0.0 }
 0x345   :  { %288 = vadd.xlane.f32.xlu1 %v287_v57  ;;  %285 = vadd.xlane.f32.xlu0 %v284_v58 }
 0x356   :  { %272 = vrot.lane.b32.xlu1 %v267_v60, %s513_s29 }
 0x35b   :  { %270 = vrot.lane.b32.xlu0 %v266_v61, %s513_s29 }
 0x3d2   :  { %v289_v62 = vpop.xlane.xlu1 %288  ;;  %v286_v63 = vpop.xlane.xlu0 %285 }
 0x3d6   :  { %v273_v0 = vpop.permute.xlu1 %272  ;;  %v271_v1 = vpop.permute.xlu0 %270 }
 0x3d7   :  { %v277_v2 = vadd.f32 %v273_v0, %v617_v38  ;;  %v276_v4 = vadd.f32 %v271_v1, %v562_v3 }
 0x3d9   :  { %v291_v6 = vadd.f32 %v289_v62, %v277_v2  ;;  %v290_v9 = vadd.f32 %v286_v63, %v276_v4 }
 0x3db   :  { %463 = vtanh.f32 %v291_v6 }
 0x3dc   :  { %465 = vtanh.f32 %v290_v9 }
 0x3e5   :  { %v678_v11 = vpop.eup %463 }
 0x3e6   :  { %v466_v12 = vpop.eup %465  ;;  %325 = vperm.xlu1 %448, %v678_v11  }
 0x3e7   :  { %320 = vperm.xlu0 %447, %v466_v12  }
 0x3ea   :  { %355 = vrot.lane.b32.xlu1 %v351_v13, %s513_s29 }
 0x406   :  { %79 = vadd.xlane.f32.xlu0 %v78_v16 }
 0x41c   :  { %117 = vrot.lane.b32.xlu0 %v562_v3, %s515_s0 }
 0x465   :  { %v326_v18 = vpop.permute.xlu1 %325 }
 0x466   :  { %v329_v19 = vmul.f32 %v326_v18, %v575_v8  ;;  %v321_v20 = vpop.permute.xlu0 %320 }
 0x467   :  { %v328_v22 = vmul.f32 %v321_v20, %v570_v7 }
 0x468   :  { %v331_v23 = vsel %vm64_vm0, %v329_v19, 0.0 }
 0x469   :  { %v330_v24 = vsel %vm64_vm0, %v328_v22, 0.0  ;;  %v356_v52 = vpop.permute.xlu1 %355 }
 0x46a   :  { %v332_v30 = vadd.f32 %v331_v23, %v330_v24 }
 0x46c   :  { %v333_v25 = vrot.slane %v332_v30, 4 }
 0x46e   :  { %v334_v34 = vadd.f32 %v333_v25, %v332_v30 }
 0x470   :  { %v335_v36 = vrot.slane %v334_v34, 2 }
 0x472   :  { %v336_v37 = vadd.f32 %v335_v36, %v334_v34 }
 0x474   :  { %v337_v40 = vrot.slane %v336_v37, 1 }
 0x476   :  { %v338_v41 = vadd.f32 %v337_v40, %v336_v37 }
 0x478   :  { %v339_v8 = vadd.f32 %v338_v41, %v317_v39 }
 0x47a   :  { %467 = vtanh.f32 %v339_v8 }
 0x484   :  { %v699_v42 = vpop.eup %467 }
 0x485   :  { %v366_v7 = vrot.slane %v699_v42, %v594_v29 }
 0x487   :  { %v368_v43 = vmul.f32 %v366_v7, %v608_v33  ;;  %v367_v44 = vmul.f32 %v366_v7, %v601_v31  ;;  %v352_v33 = vmul.f32 %v350_v10, %v617_v38  ;;  %v172_v31 = vsel %vm77_vm1, %v171_v27, 0.0 }
 0x489   :  { %v372_v45 = vsel %vm64_vm0, %v368_v43, 0.0  ;;  %v369_v17 = vsel %vm64_vm0, %v367_v44, 0.0  ;;  %v256_v44 = vmul.f32 %v661_v53, %v686_v14 }
 0x48a   :  { %373 = vadd.xlane.f32.xlu0 %v372_v45  ;;  %370 = vadd.xlane.f32.xlu1 %v369_v17  ;;  %v341_v17 = vmul.f32 %v699_v42, %v686_v14  ;;  %v136_v14 = vsel %vm135_vm4, 1.0, %v516_v21  ;;  %v176_v42 = vsel %vm175_vm5, 1.0, %v516_v21 }
 0x48b   :  { %v257_v45 = vsel %vm77_vm1, %v256_v44, 0.0 }
 0x493   :  { %v80_v48 = vpop.xlane.xlu0 %79 }
 0x494   :  { %v712_v29 = vmul.f32 %v82_v47, %v80_v48  ;;  %v342_v48 = vsel %vm77_vm1, %v341_v17, 0.0 }
 0x497   :  { %v118_v51 = vpop.permute.xlu0 %117 }
 0x498   :  { %v123_v55 = vmul.f32 %v623_v49, %v118_v51  ;;  %v209_v56 = vmul.f32 %v651_v28, %v118_v51  ;;  %v294_v58 = vmul.f32 %v466_v12, %v118_v51 }
 0x49a   :  { %v126_v62 = vsel %vm125_vm3, %v123_v55, 0.0  ;;  %v211_v63 = vsel %vm125_vm3, %v209_v56, 0.0  ;;  %v296_v0 = vsel %vm125_vm3, %v294_v58, 0.0 }
 0x49b   :  { %357 = vrot.lane.b32.xlu1 %v352_v33, %s513_s29 }
 0x4a0   :  { %119 = vrot.lane.b32.xlu0 %v617_v38, %s515_s0 }
 0x4bf   :  { %173 = vadd.xlane.f32.xlu0 %v172_v31 }
 0x517   :  { %v374_v54 = vpop.xlane.xlu0 %373  ;;  %v371_v57 = vpop.xlane.xlu1 %370 }
 0x51b   :  { %v120_v59 = vpop.permute.xlu0 %119  ;;  %v358_v2 = vpop.permute.xlu1 %357 }
 0x51c   :  { %v124_v60 = vmul.f32 %v626_v50, %v120_v59  ;;  %v210_v61 = vmul.f32 %v649_v26, %v120_v59  ;;  %v295_v5 = vmul.f32 %v678_v11, %v120_v59  ;;  %v361_v26 = vadd.f32 %v356_v52, %v562_v3 }
 0x51d   :  { %v362_v13 = vadd.f32 %v358_v2, %v617_v38 }
 0x51e   :  { %v127_v49 = vsel %vm125_vm3, %v124_v60, 0.0  ;;  %v212_v28 = vsel %vm125_vm3, %v210_v61, 0.0  ;;  %v297_v1 = vsel %vm125_vm3, %v295_v5, 0.0  ;;  %v375_v12 = vadd.f32 %v371_v57, %v361_v26 }
 0x51f   :  { %v128_v4 = vadd.f32 %v127_v49, %v126_v62  ;;  %v213_v6 = vadd.f32 %v212_v28, %v211_v63  ;;  %v298_v50 = vadd.f32 %v297_v1, %v296_v0  ;;  %v376_v23 = vadd.f32 %v374_v54, %v362_v13 }
 0x520   :  { %469 = vtanh.f32 %v375_v12  ;;  %v45_v54 = vstv %s431_s2  ;;  %v306_v1 = vsel %vm305_vm9, 1.0, %v516_v21  ;;  %v391_v12 = vsel %vm390_vm11, 1.0, %v516_v21 }
 0x521   :  { %v129_v9 = vrot.slane %v128_v4, 4  ;;  %v299_v10 = vrot.slane %v298_v50, 4  ;;  %v214_v11 = vrot.slane %v213_v6, 4  ;;  %471 = vtanh.f32 %v376_v23 }
 0x522   :  { %v84_v57 = vadd.f32 %v712_v29, %v45_v54  ;;  %v261_v29 = vsel %vm260_vm8, 1.0, %v516_v21 }
 0x523   :  { %v130_v15 = vadd.f32 %v129_v9, %v128_v4  ;;  %v300_v16 = vadd.f32 %v299_v10, %v298_v50  ;;  %v215_v18 = vadd.f32 %v214_v11, %v213_v6  ;;  %v346_v6 = vsel %vm345_vm10, 1.0, %v516_v21 }
 0x525   :  { %v131_v19 = vrot.slane %v130_v15, 2  ;;  %v301_v20 = vrot.slane %v300_v16, 2  ;;  %v216_v22 = vrot.slane %v215_v18, 2 }
 0x527   :  { %v132_v24 = vadd.f32 %v131_v19, %v130_v15  ;;  %v302_v30 = vadd.f32 %v301_v20, %v300_v16  ;;  %v217_v25 = vadd.f32 %v216_v22, %v215_v18 }
 0x529   :  { %v133_v32 = vrot.slane %v132_v24, 1  ;;  %v303_v34 = vrot.slane %v302_v30, 1  ;;  %v218_v36 = vrot.slane %v217_v25, 1 }
 0x52a   :  { %v470_v37 = vpop.eup %469 }
 0x52b   :  { %v134_v3 = vadd.f32 %v133_v32, %v132_v24  ;;  %v304_v35 = vadd.f32 %v303_v34, %v302_v30  ;;  %v219_v38 = vadd.f32 %v218_v36, %v217_v25  ;;  %v472_v39 = vpop.eup %471  ;;  %v379_v41 = vmul.f32 %v470_v37, %v118_v51 }
 0x52c   :  { %v380_v40 = vmul.f32 %v472_v39, %v120_v59  ;;  %v221_v59 = vsel %vm220_vm6, 1.0, %v516_v21 }
 0x52d   :  { %139 = vperm.xlu1 %448, %v134_v3   ;;  %309 = vperm.xlu0 %447, %v304_v35   ;;  %v381_v7 = vsel %vm125_vm3, %v379_v41, 0.0 }
 0x52e   :  { %v382_v8 = vsel %vm125_vm3, %v380_v40, 0.0 }
 0x52f   :  { %v383_v43 = vadd.f32 %v382_v8, %v381_v7 }
 0x531   :  { %224 = vperm.xlu1 %448, %v219_v38   ;;  %403 = vrot.lane.b32.xlu0 %v470_v37, %s515_s0  ;;  %v384_v47 = vrot.slane %v383_v43, 4 }
 0x533   :  { %v385_v33 = vadd.f32 %v384_v47, %v383_v43 }
 0x535   :  { %405 = vrot.lane.b32.xlu0 %v472_v39, %s515_s0  ;;  %v386_v27 = vrot.slane %v385_v33, 2 }
 0x537   :  { %v387_v31 = vadd.f32 %v386_v27, %v385_v33 }
 0x539   :  { %v388_v51 = vrot.slane %v387_v31, 1 }
 0x53b   :  { %v389_v52 = vadd.f32 %v388_v51, %v387_v31 }
 0x54c   :  { %v174_v53 = vpop.xlane.xlu0 %173 }
 0x54d   :  { %v177_v60 = vmul.f32 %v176_v42, %v174_v53 }
 0x555   :  { %258 = vadd.xlane.f32.xlu1 %v257_v45 }
 0x559   :  { %343 = vadd.xlane.f32.xlu1 %v342_v48 }
 0x56a   :  { %394 = vperm.xlu1 %448, %v389_v52  }
 0x5ac   :  { %v140_v55 = vpop.permute.xlu1 %139  ;;  %v310_v56 = vpop.permute.xlu0 %309 }
 0x5ad   :  { %v142_v58 = vmul.f32 %v140_v55, %v136_v14  ;;  %v312_v50 = vmul.f32 %v310_v56, %v306_v1 }
 0x5af   :  { %v143_v61 = vadd.f32 %v142_v58, %v84_v57 }
 0x5b0   :  { %v225_v5 = vpop.permute.xlu1 %224  ;;  %v404_v62 = vpop.permute.xlu0 %403 }
 0x5b1   :  { %v178_v63 = vadd.f32 %v177_v60, %v143_v61  ;;  %v227_v0 = vmul.f32 %v225_v5, %v221_v59  ;;  %410 = vst.msk [vmem:[%s782_s5] sm:$0xff] %vm409_vm7, %v404_v62 }
 0x5b3   :  { %v228_v49 = vadd.f32 %v227_v0, %v178_v63 }
 0x5b4   :  { %v406_v28 = vpop.permute.xlu0 %405 }
 0x5b5   :  { %411 = vst.msk [vmem:[%s782_s5 + $0x8] sm:$0xff] %vm409_vm7, %v406_v28  ;;  %s517_s5 = smov [#allocation5]  }
 0x5b6   :  { %s418_s30 = sshll.u32 %s517_s5, 4  ;;  %s419_s30 = int_to_ptr.vmem [resolvable:$true] %s418_s30 }
 0x5b7   :  { %s485_s6 = scalar_lea.vmem %s419_s30, 16  ;;  %s489_s1 = scalar_lea.vmem %s419_s30, 32 }
 0x5b8   :  { %p486_p5 = scmp.ne.s32.totalorder %s419_s30, %s485_s6  ;;  %p490_p6 = scmp.lt.s32.totalorder %s419_s30, %s419_s30 }
 0x5b9   :  { %p491_p7 = scmp.lt.s32.totalorder %s489_s1, %s485_s6 }
 0x5bb   :  { %p492_p8 = por %p491_p7, %p490_p6 }
 0x5bd   :  { %p493_p9 = pnand %p492_p8, %p486_p5 }
 0x5e2   :  { %v259_v2 = vpop.xlane.xlu1 %258 }
 0x5e3   :  { %v262_v4 = vmul.f32 %v261_v29, %v259_v2 }
 0x5e5   :  { %v263_v26 = vadd.f32 %v262_v4, %v228_v49 }
 0x5e6   :  { %v344_v9 = vpop.xlane.xlu1 %343 }
 0x5e7   :  { %v313_v10 = vadd.f32 %v312_v50, %v263_v26  ;;  %v347_v11 = vmul.f32 %v346_v6, %v344_v9 }
 0x5e9   :  { %v348_v13 = vadd.f32 %v347_v11, %v313_v10 }
 0x5ea   :  { %v395_v15 = vpop.permute.xlu1 %394 }
 0x5eb   :  { %v397_v16 = vmul.f32 %v395_v15, %v391_v12 }
 0x5ed   :  { %v398_v18 = vadd.f32 %v397_v16, %v348_v13 }
 0x5ef   :  { %400 = vst.msk [vmem:[#allocation5] sm:$0x1] %vm399_vm12, %v398_v18 }
 0x5f0   :  { %496 = shalt.err (!%p493_p9)
}
 0x5f1   :  { %s497_s9 = scalar_lea.hbm %s781_s4, 16 }
 0x5f2   :  { %p498_p10 = scmp.ne.s32.totalorder %s781_s4, %s497_s9  ;;  %p501_p11 = scmp.lt.u32.totalorder %s497_s9, %s781_s4 }
 0x5f4   :  { %p503_p12 = pnand %p501_p11, %p498_p10 }
 0x5f6   :  { %506 = shalt.err (!%p503_p12)
}
 0x5f7   :  { %421 = dma.vmem_to_hbm [thread:$0]  %s419_s30, 16, %s781_s4, [#allocation3]  }
 0x5f8   :  { %509 = dma.done.wait [#allocation3], 16  }
 0x5f9   :  { %510 = vsyncadd [#allocation3], 4294967280 }
 0x5fa   :  { %429 = vsyncpa [#allocation3], 1 }
 0x5fb   :  { %430 = vsyncpa [#allocation4], 1 }

</bundles_post_ra>
